<compile_context>
chip_gen: v5e
topology: v5e:2x2
jax: 0.10.0
libtpu: 0.0.40
codegen_flags: <defaults>
</compile_context>

<pallas_src>
import jax
import jax.numpy as jnp
from jax.experimental import pallas as pl
from jax.experimental.pallas import tpu as pltpu

BN_EPS = 1e-5
_LANE = 128


def _round_up(n, m):
    return ((n + m - 1) // m) * m


def _neck_kernel(x_ref, w0_ref, b0_ref, w1_ref, b1_ref, out_ref):
    """One batch tile of the fused neck forward (eval mode).

    x_ref  : (TILE_B, C, S)   native NCHW activations with H*W collapsed (no transpose)
    w0_ref : (C, HID_P)       fc0 weight with BN scale and 1/S mean divisor pre-folded
    b0_ref : (1, HID_P)       fc0 bias with BN mean/scale pre-folded (f32)
    w1_ref : (HID_P, OUT_P)   fc1 weight (transposed, lane-padded)
    b1_ref : (1, OUT_P)       fc1 bias (lane-padded, f32)
    out_ref: (TILE_B, OUT_P)
    """
    # Sum-pool over the spatial (lane) axis with f32 accumulation; 1/S is folded into w0.
    pooled = jnp.sum(x_ref[...].astype(jnp.float32), axis=2)          # (TILE_B, C)

    # fc0 (+ folded BatchNorm1d(affine=False), eval) + ReLU.  MXU accumulates in f32;
    # the LHS cast is a no-op for f32 weights, bf16 for the bf16-weight fast path.
    h = jnp.dot(pooled.astype(w0_ref.dtype), w0_ref[...],
                preferred_element_type=jnp.float32) + b0_ref[...]
    h = jnp.maximum(h, 0.0)

    # Dropout: identity in eval mode.
    # TODO(synk): training-mode dropout (pltpu.prng_random_bits mask) not implemented.

    # fc1 + ReLU.
    y = jnp.dot(h.astype(w1_ref.dtype), w1_ref[...],
                preferred_element_type=jnp.float32) + b1_ref[...]
    out_ref[...] = jnp.maximum(y, 0.0).astype(out_ref.dtype)


def _resident_spec(shape):
    """BlockSpec for a weight/bias that stays resident in VMEM across all grid steps.

    Single-buffered via pipeline_mode=pl.Buffered(1) when available.
    Returns (spec, buffer_count) so the VMEM heuristic counts the real footprint.
    """
    index_map = lambda i: (0,) * len(shape)
    if hasattr(pl, "Buffered"):
        try:
            return pl.BlockSpec(shape, index_map, pipeline_mode=pl.Buffered(1)), 1
        except TypeError:  # older BlockSpec without pipeline_mode kwarg
            pass
    return pl.BlockSpec(shape, index_map), 2


def _pick_tile_and_vmem(B, S, C, hid_p, out_p, x_bytes, w_bytes, buf_factor):
    """Largest batch tile whose double-buffered x DMA fits the VMEM budget."""
    try:
        vmem_cap = int(pltpu.get_tpu_info().vmem_capacity_bytes)
    except Exception:  # pragma: no cover - conservative fallback (v7x per-TC VMEM)
        vmem_cap = 64 << 20

    # 64 MiB per-TC parts (v7x): keep headroom; 128 MiB parts (v5e/v6e): use most of it.
    frac = 0.6 if vmem_cap <= (64 << 20) else 0.8
    budget = int(vmem_cap * frac)

    # Resident weights/biases (biases stay f32), times their actual buffer count.
    resident = buf_factor * (w_bytes * (C * hid_p + hid_p * out_p) + 4 * (hid_p + out_p))
    # Per batch row: double-buffered x block, f32 upcast transient of a sub-f32 x tile
    # in the pooling step, and the double-buffered output block.
    upcast = S * C * 4 if x_bytes < 4 else 0
    per_row = 2 * S * C * x_bytes + upcast + 2 * out_p * 4
    avail = max(budget - resident, per_row)

    tile_b = max(1, avail // per_row)
    if tile_b >= B:
        tile_b = B
    else:
        tile_b = max(8, (tile_b // 8) * 8)      # sublane-aligned blocks
        tile_b = min(tile_b, 1024)
    # Keep >=2 grid steps so v7x's two TensorCores both get work (cheap on 1-TC chips).
    if B > 8:
        tile_b = min(tile_b, _round_up(-(-B // 2), 8))

    needed = (resident + tile_b * per_row
              + tile_b * (C + hid_p) * 4          # pooled / h temporaries
              + (4 << 20))                        # compiler scratch headroom
    vmem_limit = int(min(max(needed, 32 << 20), vmem_cap))
    # TODO(synk): tile over hid_p (second grid axis) when even bf16 weights approach half
    #             of per-TC VMEM (large-neck configs on v7x) instead of shrinking tile_b.
    return int(tile_b), int(vmem_limit)


def prepare_neck_params(params, spatial_size, *, weight_dtype=jnp.float32):
    """One-time constant fold + pad + cast, hoisted out of the per-call path.

    Folds BatchNorm1d(affine=False, eval): (h - rm) * rsqrt(rv + eps), and the 1/S
    avg-pool divisor, into fc0's weight/bias.  Lane-pads hid/out widths to multiples
    of 128 (zero columns -> relu(0)=0 -> no effect on the real outputs).
    Use weight_dtype=jnp.bfloat16 to halve resident weight VMEM (recommended on v7x).
    """
    w0t, b0, rm, rv, w1t, b1 = (params["w0t"], params["b0"], params["rm"],
                                params["rv"], params["w1t"], params["b1"])
    hid = w0t.shape[1]
    out_c = w1t.shape[1]

    scale = jax.lax.rsqrt(rv.astype(jnp.float32) + BN_EPS)              # (1, hid)
    w0f = w0t.astype(jnp.float32) * scale / jnp.float32(spatial_size)   # (C, hid)
    b0f = (b0.astype(jnp.float32) - rm.astype(jnp.float32)) * scale     # (1, hid)

    hid_p = _round_up(hid, _LANE)
    out_p = _round_up(out_c, _LANE)
    w0f = jnp.pad(w0f, ((0, 0), (0, hid_p - hid))).astype(weight_dtype)
    b0f = jnp.pad(b0f, ((0, 0), (0, hid_p - hid)))                      # biases stay f32
    w1f = jnp.pad(w1t.astype(jnp.float32),
                  ((0, hid_p - hid), (0, out_p - out_c))).astype(weight_dtype)
    b1f = jnp.pad(b1.astype(jnp.float32), ((0, 0), (0, out_p - out_c)))

    return {"w0": w0f, "b0": b0f, "w1": w1f, "b1": b1f,
            "out_channels": out_c, "spatial_size": spatial_size}


def nonlinear_neck_v0(x_nchw, prepared):
    """x_nchw: (B, C, H, W), f32 or producer-emitted bf16.
    Returns [ (B, out_channels) ] like the torch module (eval mode).
    """
    B, C, H, W = x_nchw.shape
    S = H * W
    assert S == prepared["spatial_size"], "params were folded for a different H*W"
    x = x_nchw.reshape(B, C, S)                      # contiguous collapse; no HBM copy

    w0, b0, w1, b1 = prepared["w0"], prepared["b0"], prepared["w1"], prepared["b1"]
    out_c = prepared["out_channels"]
    hid_p = w0.shape[1]
    out_p = w1.shape[1]

    x_bytes = jnp.dtype(x.dtype).itemsize
    w_bytes = jnp.dtype(w0.dtype).itemsize

    # Resident (single-buffered) weight/bias specs; note for typical backbones C (512/2048)
    # is already 128-aligned — padding C here would require copying x, defeating zero-copy.
    w0_spec, f0 = _resident_spec((C, hid_p))
    b0_spec, f1 = _resident_spec((1, hid_p))
    w1_spec, f2 = _resident_spec((hid_p, out_p))
    b1_spec, f3 = _resident_spec((1, out_p))
    buf_factor = max(f0, f1, f2, f3)

    tile_b, vmem_limit = _pick_tile_and_vmem(B, S, C, hid_p, out_p,
                                             x_bytes, w_bytes, buf_factor)
    grid = (pl.cdiv(B, tile_b),)

    flops = 2 * B * C * hid_p + 2 * B * hid_p * out_p + B * S * C
    bytes_accessed = (B * S * C * x_bytes
                      + w_bytes * (C * hid_p + hid_p * out_p) + 4 * (hid_p + out_p)
                      + 4 * B * out_p)

    out = pl.pallas_call(
        _neck_kernel,
        out_shape=jax.ShapeDtypeStruct((B, out_p), jnp.float32),
        grid=grid,
        in_specs=[
            pl.BlockSpec((tile_b, C, S), lambda i: (i, 0, 0)),   # x: batch-tiled, native NCHW
            w0_spec, b0_spec, w1_spec, b1_spec,                  # resident weights / biases
        ],
        out_specs=pl.BlockSpec((tile_b, out_p), lambda i: (i, 0)),
        compiler_params=pltpu.CompilerParams(
            dimension_semantics=("parallel",),
            vmem_limit_bytes=vmem_limit,
        ),
        cost_estimate=pl.CostEstimate(
            flops=flops, transcendentals=0, bytes_accessed=bytes_accessed),
    )(x, w0, b0, w1, b1)

    return [out[:, :out_c]]


def init_params(key, in_channels, hid_channels, out_channels):
    """Deterministic init matching _init_weights(init_linear='normal', std=0.01, bias=0.0)."""
    k0, k1 = jax.random.split(key)
    w0 = 0.01 * jax.random.normal(k0, (hid_channels, in_channels), jnp.float32)
    w1 = 0.01 * jax.random.normal(k1, (out_channels, hid_channels), jnp.float32)
    return {
        "w0t": w0.T,                                          # (C, HID)
        "b0": jnp.zeros((1, hid_channels), jnp.float32),
        "rm": jnp.zeros((1, hid_channels), jnp.float32),      # BN running_mean init
        "rv": jnp.ones((1, hid_channels), jnp.float32),       # BN running_var init
        "w1t": w1.T,                                          # (HID, OUT)
        "b1": jnp.zeros((1, out_channels), jnp.float32),
    }


def _reference(x_nchw, params):
    """Pure-JAX reference (un-folded) for sanity checking."""
    B = x_nchw.shape[0]
    pooled = jnp.mean(x_nchw.astype(jnp.float32), axis=(2, 3)).reshape(B, -1)
    h = pooled @ params["w0t"] + params["b0"]
    h = (h - params["rm"]) / jnp.sqrt(params["rv"] + BN_EPS)
    h = jnp.maximum(h, 0.0)
    y = h @ params["w1t"] + params["b1"]
    return jnp.maximum(y, 0.0)


if __name__ == "__main__":
    B, C, H, W = 2, 4, 16, 16
    HID, OUT = 32, 16

    key = jax.random.PRNGKey(0)
    kx, kp = jax.random.split(key)
    x = jax.random.normal(kx, (B, C, H, W), jnp.float32)
    params = init_params(kp, C, HID, OUT)
    ref = _reference(x, params)

    # f32 path (exact-ish check).
    prepared = prepare_neck_params(params, H * W)
    out = jax.block_until_ready(nonlinear_neck_v0(x, prepared)[0])
    assert out.shape == (B, OUT), out.shape
    assert jnp.allclose(out, ref, atol=1e-5, rtol=1e-4), float(jnp.max(jnp.abs(out - ref)))

    # bf16 fast path (producer-emitted bf16 x + bf16 weights), looser tolerance.
    prepared_bf16 = prepare_neck_params(params, H * W, weight_dtype=jnp.bfloat16)
    out_bf16 = jax.block_until_ready(
        nonlinear_neck_v0(x.astype(jnp.bfloat16), prepared_bf16)[0])
    assert out_bf16.shape == (B, OUT), out_bf16.shape
    assert jnp.allclose(out_bf16, ref, atol=1e-2, rtol=5e-2), \
        float(jnp.max(jnp.abs(out_bf16 - ref)))

    print("KERNEL_OK")
</pallas_src>

<mosaic_0001>
module attributes {stable_mosaic.version = 11 : i64} {
  func.func @_neck_kernel(%arg0: i32, %arg1: memref<2x4x256xf32, #tpu.memory_space<vmem>>, %arg2: memref<4x128xf32, #tpu.memory_space<vmem>>, %arg3: memref<1x128xf32, #tpu.memory_space<vmem>>, %arg4: memref<128x128xf32, #tpu.memory_space<vmem>>, %arg5: memref<1x128xf32, #tpu.memory_space<vmem>>, %arg6: memref<2x128xf32, #tpu.memory_space<vmem>>) attributes {dimension_semantics = [#tpu.dimension_semantics<parallel>], iteration_bounds = array<i64: 1>, scalar_prefetch = 0 : i64, scratch_operands = 0 : i64, tpu.core_type = #tpu.core_type<tc>, window_params = [{transform_indices = @transform_0, window_bounds = array<i64: 2, 4, 256>}, {pipeline_mode = #tpu.pipeline_mode<synchronous>, transform_indices = @transform_1, window_bounds = array<i64: 4, 128>}, {pipeline_mode = #tpu.pipeline_mode<synchronous>, transform_indices = @transform_2, window_bounds = array<i64: 1, 128>}, {pipeline_mode = #tpu.pipeline_mode<synchronous>, transform_indices = @transform_3, window_bounds = array<i64: 128, 128>}, {pipeline_mode = #tpu.pipeline_mode<synchronous>, transform_indices = @transform_4, window_bounds = array<i64: 1, 128>}, {transform_indices = @transform_5, window_bounds = array<i64: 2, 128>}]} {
    %c0 = arith.constant 0 : index
    %c0_0 = arith.constant 0 : index
    %c0_1 = arith.constant 0 : index
    %0 = vector.load %arg1[%c0, %c0_0, %c0_1] : memref<2x4x256xf32, #tpu.memory_space<vmem>>, vector<2x4x256xf32>
    %cst = arith.constant dense<0.000000e+00> : vector<2x4xf32>
    %1 = vector.multi_reduction <add>, %0, %cst [2] : vector<2x4x256xf32> to vector<2x4xf32>
    %c0_2 = arith.constant 0 : index
    %c0_3 = arith.constant 0 : index
    %2 = vector.load %arg2[%c0_2, %c0_3] : memref<4x128xf32, #tpu.memory_space<vmem>>, vector<4x128xf32>
    %cst_4 = arith.constant dense<0.000000e+00> : vector<2x128xf32>
    %3 = tpu.matmul %1, %2, %cst_4 {dimension_numbers = #tpu.dot_dimension_numbers<[1], [0], [0], [1], [0, 0, 1, 1], [], []>} : vector<2x4xf32>, vector<4x128xf32>, vector<2x128xf32> -> vector<2x128xf32>
    %c0_5 = arith.constant 0 : index
    %c0_6 = arith.constant 0 : index
    %4 = vector.load %arg3[%c0_5, %c0_6] : memref<1x128xf32, #tpu.memory_space<vmem>>, vector<1x128xf32>
    %5 = vector.broadcast %4 : vector<1x128xf32> to vector<2x128xf32>
    %6 = arith.addf %3, %5 : vector<2x128xf32>
    %cst_7 = arith.constant 0.000000e+00 : f32
    %7 = vector.broadcast %cst_7 : f32 to vector<2x128xf32>
    %8 = arith.maximumf %6, %7 : vector<2x128xf32>
    %c0_8 = arith.constant 0 : index
    %c0_9 = arith.constant 0 : index
    %9 = vector.load %arg4[%c0_8, %c0_9] : memref<128x128xf32, #tpu.memory_space<vmem>>, vector<128x128xf32>
    %cst_10 = arith.constant dense<0.000000e+00> : vector<2x128xf32>
    %10 = tpu.matmul %8, %9, %cst_10 {dimension_numbers = #tpu.dot_dimension_numbers<[1], [0], [0], [1], [0, 0, 1, 1], [], []>} : vector<2x128xf32>, vector<128x128xf32>, vector<2x128xf32> -> vector<2x128xf32>
    %c0_11 = arith.constant 0 : index
    %c0_12 = arith.constant 0 : index
    %11 = vector.load %arg5[%c0_11, %c0_12] : memref<1x128xf32, #tpu.memory_space<vmem>>, vector<1x128xf32>
    %12 = vector.broadcast %11 : vector<1x128xf32> to vector<2x128xf32>
    %13 = arith.addf %10, %12 : vector<2x128xf32>
    %cst_13 = arith.constant 0.000000e+00 : f32
    %14 = vector.broadcast %cst_13 : f32 to vector<2x128xf32>
    %15 = arith.maximumf %13, %14 : vector<2x128xf32>
    %c0_14 = arith.constant 0 : index
    %c0_15 = arith.constant 0 : index
    %16 = vector.load %arg6[%c0_14, %c0_15] : memref<2x128xf32, #tpu.memory_space<vmem>>, vector<2x128xf32>
    tpu.vector_store %arg6[%c0_14, %c0_15], %15 {strides = array<i32>} : memref<2x128xf32, #tpu.memory_space<vmem>>, vector<2x128xf32>,
    return
  }
  func.func @transform_0(%arg0: i32) -> (i32, i32, i32) {
    %c0_i32 = arith.constant 0 : i32
    %c0_i32_0 = arith.constant 0 : i32
    %c0_i32_1 = arith.constant 0 : i32
    return %arg0, %c0_i32, %c0_i32_0 : i32, i32, i32
  }
  func.func @transform_1(%arg0: i32) -> (i32, i32) {
    %c0_i32 = arith.constant 0 : i32
    %c0_i32_0 = arith.constant 0 : i32
    %c0_i32_1 = arith.constant 0 : i32
    return %c0_i32, %c0_i32_0 : i32, i32
  }
  func.func @transform_2(%arg0: i32) -> (i32, i32) {
    %c0_i32 = arith.constant 0 : i32
    %c0_i32_0 = arith.constant 0 : i32
    %c0_i32_1 = arith.constant 0 : i32
    return %c0_i32, %c0_i32_0 : i32, i32
  }
  func.func @transform_3(%arg0: i32) -> (i32, i32) {
    %c0_i32 = arith.constant 0 : i32
    %c0_i32_0 = arith.constant 0 : i32
    %c0_i32_1 = arith.constant 0 : i32
    return %c0_i32, %c0_i32_0 : i32, i32
  }
  func.func @transform_4(%arg0: i32) -> (i32, i32) {
    %c0_i32 = arith.constant 0 : i32
    %c0_i32_0 = arith.constant 0 : i32
    %c0_i32_1 = arith.constant 0 : i32
    return %c0_i32, %c0_i32_0 : i32, i32
  }
  func.func @transform_5(%arg0: i32) -> (i32, i32) {
    %c0_i32 = arith.constant 0 : i32
    %c0_i32_0 = arith.constant 0 : i32
    return %arg0, %c0_i32 : i32, i32
  }
}

</mosaic_0001>

<bundles_post_ra>
// kernel: tpu_custom_call.1
= control target key start
LH: loop header
LB: loop body
LE: loop exit
PB: predicated region body
PF: predicated region fallthrough
CT: control target
= control target key end

     0   :  { %10 = vsyncpa [#allocation3], 0  ;;  %s358_s0 = inlined_call_operand.hbm [shape: f32[2,4,256], index: 0, kind: input, shape index: {}]   ;;  %s359_s1 = inlined_call_operand.hbm [shape: f32[4,128], index: 1, kind: input, shape index: {}]   ;;  %s360_s2 = inlined_call_operand.vmem [shape: f32[1,128], index: 2, kind: input, shape index: {}]   ;;  %s361_s3 = inlined_call_operand.hbm [shape: f32[128,128], index: 3, kind: input, shape index: {}]   ;;  %s362_s4 = inlined_call_operand.vmem [shape: f32[1,128], index: 4, kind: input, shape index: {}]   ;;  %s363_s5 = inlined_call_operand.hbm [shape: f32[2,128], index: 5, kind: output, shape index: {}]  }
   0x1   :  { %11 = vsyncpa [#allocation6], 0  ;;  %s31_s20 = sshll.u32 %s359_s1, 4  ;;  %s32_s20 = int_to_ptr.hbm [resolvable:$true] %s31_s20 }
   0x2   :  { %12 = vsyncpa [#allocation4], 0  ;;  %s304_s21 = smov [#allocation5]   ;;  %s17_s25 = sshll.u32 %s358_s0, 4  ;;  %s18_s25 = int_to_ptr.hbm [resolvable:$true] %s17_s25 }
   0x3   :  { %s33_s22 = sshll.u32 %s304_s21, 4  ;;  %s305_s26 = smov [#allocation2]   ;;  %s34_s22 = int_to_ptr.vmem [resolvable:$true] %s33_s22 }
   0x4   :  { %36 = dma.hbm_to_vmem [thread:$0]  %s32_s20, 64, %s34_s22, [#allocation6]  }
   0x5   :  { %s19_s27 = sshll.u32 %s305_s26, 4  ;;  %s306_s28 = smov 128   ;;  %s20_s27 = int_to_ptr.vmem [resolvable:$true] %s19_s27 }
   0x6   :  { %s307_s29 = smov 8   ;;  %s43_s1 = sshll.u32 %s361_s3, 4  ;;  %s44_s1 = int_to_ptr.hbm [resolvable:$true] %s43_s1 }
   0x7   :  { %25 = dma.hbm_to_vmem [thread:$0]  %s18_s25, 256, %s20_s27, [#allocation3], %s306_s28, %s306_s28, %s307_s29  }
   0x8   :  { %s308_s7 = smov [#allocation7]  }
   0x9   :  { %s45_s8 = sshll.u32 %s308_s7, 4  ;;  %s46_s8 = int_to_ptr.vmem [resolvable:$true] %s45_s8 }
   0xa   :  { %51 = dma.hbm_to_vmem [thread:$0]  %s44_s1, 2048, %s46_s8, [#allocation6], %s306_s28, %s306_s28, %s307_s29  }
   0xb   :  { %298 = dma.done.wait [#allocation3], 256  }
   0xc   :  { %299 = vsyncadd [#allocation3], 4294967040 }
   0xd   :  { %300 = dma.done.wait [#allocation6], 2112  }
   0xe   :  { %301 = vsyncadd [#allocation6], 4294965184  ;;  %v66_v0 = vld [vmem:[#allocation2] sm:$0xff]  ;;  %v67_v1 = vld [vmem:[#allocation2 + $0x8] sm:$0xff]  ;;  %vm81_vm0 = vcmask 1043456   ;;  %v99_v26 = vlaneseq  ;;  %vm103_vm1 = vcmask 1041409  }
   0xf   :  { %70 = vst [vmem:[#allocation1] ss:$2 sm:$0xff] %v66_v0  ;;  %v92_v12 = vld [vmem:[#allocation5] sm:$0xf]  ;;  %v146_v14 = vld [vmem:[#allocation7 + $0x70] sm:$0xff]  ;;  %v145_v15 = vld [vmem:[#allocation7 + $0x68] sm:$0xff] }
  0x10   :  { %74 = vst [vmem:[#allocation1 + $0x10] ss:$2 sm:$0xff] %v67_v1  ;;  %192 = vmatpush.msk.msra.mxu0 %vm81_vm0, %v92_v12  ;;  %v147_v13 = vld [vmem:[#allocation7 + $0x78] sm:$0xff]  ;;  %v144_v16 = vld [vmem:[#allocation7 + $0x60] sm:$0xff]  ;;  %v142_v18 = vld [vmem:[#allocation7 + $0x50] sm:$0xff]  ;;  %v100_v28 = vand.u32 127, %v99_v26 }
  0x11   :  { %152 = vmatpush.msra.mxu1 %v147_v13  ;;  %v143_v17 = vld [vmem:[#allocation7 + $0x58] sm:$0xff]  ;;  %v141_v19 = vld [vmem:[#allocation7 + $0x48] sm:$0xff]  ;;  %v140_v20 = vld [vmem:[#allocation7 + $0x40] sm:$0xff]  ;;  %vm105_vm2 = vcmask 31744   ;;  %s309_s11 = smov [#allocation8]   ;;  %s181_s15 = sshll.u32 %s363_s5, 4  ;;  %s182_s15 = int_to_ptr.hbm [resolvable:$true] %s181_s15 }
  0x12   :  { %v139_v21 = vld [vmem:[#allocation7 + $0x38] sm:$0xff]  ;;  %v138_v22 = vld [vmem:[#allocation7 + $0x30] sm:$0xff]  ;;  %v137_v23 = vld [vmem:[#allocation7 + $0x28] sm:$0xff]  ;;  %s179_s12 = sshll.u32 %s309_s11, 4  ;;  %s180_s12 = int_to_ptr.vmem [resolvable:$true] %s179_s12 }
  0x13   :  { %153 = vmatpush.msra.mxu1 %v146_v14  ;;  %v136_v25 = vld [vmem:[#allocation7 + $0x20] sm:$0xff]  ;;  %v135_v27 = vld [vmem:[#allocation7 + $0x18] sm:$0xff]  ;;  %v134_v33 = vld [vmem:[#allocation7 + $0x10] sm:$0xff] }
  0x14   :  { %v133_v34 = vld [vmem:[#allocation7 + $0x8] sm:$0xff]  ;;  %v132_v35 = vld [vmem:[#allocation7] sm:$0xff] }
  0x15   :  { %154 = vmatpush.msra.mxu1 %v145_v15  ;;  %v200_v36 = vld [vmem:[%s360_s2] ss:$0 sm:$0xff] }
  0x16   :  { %v71_v2 = vld.sshfl [vmem:[#allocation1] sm:$0xff pattern:$0x75316420]  ;;  %v72_v3 = vld.sshfl [vmem:[#allocation1 + $0x8] sm:$0xff pattern:$0x75316420] }
  0x17   :  { %v82_v4 = vsel %vm81_vm0, %v71_v2, 0.0  ;;  %v83_v5 = vsel %vm81_vm0, %v72_v3, 0.0  ;;  %v75_v7 = vld.sshfl [vmem:[#allocation1 + $0x10] sm:$0xff pattern:$0x75316420]  ;;  %155 = vmatpush.msra.mxu1 %v144_v16 }
  0x18   :  { %v84_v6 = vadd.f32 %v83_v5, %v82_v4  ;;  %v76_v8 = vld.sshfl [vmem:[#allocation1 + $0x18] sm:$0xff pattern:$0x75316420]  ;;  %v87_v9 = vsel %vm81_vm0, %v75_v7, 0.0  ;;  %v201_v40 = vld [vmem:[%s362_s4] ss:$0 sm:$0xff] }
  0x19   :  { %v88_v10 = vsel %vm81_vm0, %v76_v8, 0.0  ;;  %156 = vmatpush.msra.mxu1 %v143_v17 }
  0x1a   :  { %85 = vadd.xlane.f32.xlu0 %v84_v6  ;;  %v89_v11 = vadd.f32 %v88_v10, %v87_v9 }
  0x1b   :  { %157 = vmatpush.msra.mxu1 %v142_v18 }
  0x1d   :  { %158 = vmatpush.msra.mxu1 %v141_v19 }
  0x1f   :  { %159 = vmatpush.msra.mxu1 %v140_v20 }
  0x21   :  { %160 = vmatpush.msra.mxu1 %v139_v21 }
  0x22   :  { %90 = vadd.xlane.f32.xlu0 %v89_v11 }
  0x23   :  { %161 = vmatpush.msra.mxu1 %v138_v22 }
  0x25   :  { %162 = vmatpush.msra.mxu1 %v137_v23 }
  0x27   :  { %163 = vmatpush.msra.mxu1 %v136_v25 }
  0x29   :  { %164 = vmatpush.msra.mxu1 %v135_v27 }
  0x2b   :  { %165 = vmatpush.msra.mxu1 %v134_v33 }
  0x2d   :  { %166 = vmatpush.msra.mxu1 %v133_v34 }
  0x2f   :  { %167 = vmatpush.msra.mxu1 %v132_v35 }
  0x8d   :  { %v86_v24 = vpop.xlane.xlu0 %85 }
  0x8e   :  { %v101_v30 = vperm.slane %v86_v24, %v100_v28 }
  0x95   :  { %v91_v29 = vpop.xlane.xlu0 %90 }
  0x96   :  { %v102_v31 = vperm.slane %v91_v29, %v100_v28 }
  0x98   :  { %v104_v32 = vsel %vm103_vm1, %v102_v31, %v101_v30 }
  0x99   :  { %193 = vmatmul.msk.f32.vlgmr.msra.gmra.mxu0 %vm105_vm2, %v104_v32 }
 0x116   :  { %v128_v37 = vpop.f32.mrf.mxu0 }
 0x117   :  { %v129_v38 = vadd.f32 %v200_v36, %v128_v37 }
 0x119   :  { %v131_v39 = vmax.f32 %v129_v38, 0.0 }
 0x11b   :  { %168 = vmatmul.f32.vlgmr.msra.gmra.mxu1 %v131_v39 }
 0x198   :  { %v169_v41 = vpop.f32.mrf.mxu1 }
 0x199   :  { %v170_v42 = vadd.f32 %v201_v40, %v169_v41 }
 0x19b   :  { %v172_v43 = vmax.f32 %v170_v42, 0.0 }
 0x19d   :  { %173 = vst [vmem:[#allocation8] sm:$0x3] %v172_v43 }
 0x19e   :  { %184 = dma.vmem_to_hbm [thread:$0]  %s180_s12, 32, %s182_s15, [#allocation4]  }
 0x19f   :  { %302 = dma.done.wait [#allocation4], 32  }
 0x1a0   :  { %303 = vsyncadd [#allocation4], 4294967264 }
 0x1a1   :  { %189 = vsyncpa [#allocation3], 1 }
 0x1a2   :  { %190 = vsyncpa [#allocation6], 1 }
 0x1a3   :  { %191 = vsyncpa [#allocation4], 1 }

</bundles_post_ra>
